<compile_context>
chip_gen: v6e
topology: v6e:2x2x1
jax: 0.10.0
libtpu: 0.0.40
codegen_flags: <defaults>
</compile_context>

<pallas_src>
import functools

import jax
import jax.numpy as jnp
from jax.experimental import pallas as pl
from jax.experimental.pallas import tpu as pltpu


# ---------------------------------------------------------------------------
# Kernel
# ---------------------------------------------------------------------------
def _resnet_block_kernel(x_ref, m1_ref, m2_ref, a_ref, o_ref, *, H, eps):
    """One (B, H, L) batch-block per grid step; every tensor is lane-dense."""
    B, _, L = x_ref.shape
    BH = B * H

    x = x_ref[...].reshape(BH, L)        # (B*H, L) working layout, input dtype
    avg = a_ref[...]                     # (L, L) f32: per-channel mean/(H*W)
    cdt = m1_ref.dtype                   # MXU operand dtype (f32 or bf16)

    # Reflect-shift operators along H, built once from iota: 0/1 matrices so
    # the H reflect pad becomes two small MXU matmuls (MXU is otherwise idle)
    # instead of an (H+2)-row concat + misaligned sublane slices (relayouts).
    r = jax.lax.broadcasted_iota(jnp.int32, (BH, BH), 0)
    s = jax.lax.broadcasted_iota(jnp.int32, (BH, BH), 1)
    rm = r % H
    s_up = (s == jnp.where(rm == 0, r + 1, r - 1)).astype(jnp.float32)
    s_dn = (s == jnp.where(rm == H - 1, r - 1, r + 1)).astype(jnp.float32)

    def conv3x3(a, m_ref):
        # kx taps + c_in contraction + W reflect pad are folded host-side into
        # three block-banded (L, L) matrices m_ref[ky].  The H reflect pad is
        # applied with the s_up / s_dn shift operators.
        a = a.astype(cdt)
        p0 = jnp.dot(a, m_ref[0], preferred_element_type=jnp.float32)
        p1 = jnp.dot(a, m_ref[1], preferred_element_type=jnp.float32)
        p2 = jnp.dot(a, m_ref[2], preferred_element_type=jnp.float32)
        # out[h] = pad[h-1]@m0 + a[h]@m1 + pad[h+1]@m2  (reflect at h=0, H-1)
        # Conv bias omitted on purpose: the affine-free InstanceNorm that
        # always follows cancels a per-channel constant shift exactly.
        return (jnp.dot(s_up, p0, preferred_element_type=jnp.float32) + p1 +
                jnp.dot(s_dn, p2, preferred_element_type=jnp.float32))

    def instance_norm(a):
        # Per-image, per-channel stats: sublane reduce over H, then one small
        # matmul with the block-diagonal channel-average matrix does the W
        # reduction and broadcasts back to lanes.  All stats in f32 (v5e VPU).
        a3 = a.reshape(B, H, L)
        col = jnp.sum(a3, axis=1)                                    # (B, L)
        mean = jnp.dot(col, avg, preferred_element_type=jnp.float32)
        d = a3 - mean[:, None, :]
        varc = jnp.sum(d * d, axis=1)                                # (B, L)
        var = jnp.dot(varc, avg, preferred_element_type=jnp.float32)
        inv = jax.lax.rsqrt(var + eps)
        return (d * inv[:, None, :]).reshape(BH, L)                  # f32

    h = instance_norm(conv3x3(x, m1_ref))
    h = jnp.maximum(h, 0.0)               # ReLU(inplace=True)
    # TODO(synk): use_dropout=False config; the nn.Dropout(0.5) branch is omitted.
    h = instance_norm(conv3x3(h, m2_ref))

    o_ref[...] = (x.astype(jnp.float32) + h).reshape(B, H, L).astype(o_ref.dtype)


# ---------------------------------------------------------------------------
# Host-side parameter preparation (call once, at parameter-load time)
# ---------------------------------------------------------------------------
def prepare_conv_mats(w_oihw, W):
    """Fold kx taps + c_in contraction + W reflect padding of a 3x3 conv into
    three (W*C, W*C) block-banded matrices (one per ky tap)."""
    C = w_oihw.shape[0]
    dt = w_oihw.dtype
    w_hwio = jnp.transpose(w_oihw, (2, 3, 1, 0))              # (ky, kx, ci, co)

    # Banded B[ky]: ((W+2)*C, W*C); B[ky][(w+kx)*C+ci, w*C+co] = w_hwio[ky,kx,ci,co]
    r = jnp.arange(W + 2)[:, None]
    c = jnp.arange(W)[None, :]
    d = r - c                                                  # (W+2, W)
    valid = (d >= 0) & (d <= 2)
    blocks = jnp.where(valid[None, :, :, None, None],
                       w_hwio[:, jnp.clip(d, 0, 2)], 0)        # (3, W+2, W, C, C)
    band = jnp.transpose(blocks, (0, 1, 3, 2, 4)).reshape(3, (W + 2) * C, W * C)

    # Reflect-pad-along-W operator P: padded_row = row @ P,  P: (W*C, (W+2)*C)
    q = jnp.arange(W + 2)
    src = jnp.where(q == 0, 1, jnp.where(q == W + 1, W - 2, q - 1))
    sel_q = (src[None, :] == jnp.arange(W)[:, None]).astype(dt)   # (W, W+2)
    eye = jnp.eye(C, dtype=dt)
    pmat = jnp.einsum('wq,ij->wiqj', sel_q, eye).reshape(W * C, (W + 2) * C)

    return jnp.matmul(pmat, band)        # (3, W*C, W*C)


def channel_average_mat(C, W, H):
    """(W*C, W*C) matrix mapping column sums -> per-channel mean broadcast."""
    return jnp.tile(jnp.eye(C, dtype=jnp.float32), (W, W)) / float(H * W)


def block_diag(m, P):
    """Expand (..., K, K) -> (..., P*K, P*K) block-diagonal with P copies."""
    if P == 1:
        return m
    K = m.shape[-1]
    eye_p = jnp.eye(P, dtype=m.dtype)
    out = jnp.einsum('pq,...ij->...piqj', eye_p, m)
    return out.reshape(*m.shape[:-2], P * K, P * K)


def choose_lane_pack(N, W, C):
    """How many images to pack side-by-side on the lane axis so P*W*C % 128 == 0."""
    WC = W * C
    if WC % 128 == 0:
        return 1
    for p in range(1, N + 1):
        if N % p == 0 and (p * WC) % 128 == 0:
            return p
    return 1


def prepare_resnet_block_params(w1, w2, *, H, W, lane_pack, mxu_dtype=None):
    """Parameter-load-time weight folding (hoisted out of the per-call path).

    Conv biases are intentionally unused: a per-channel constant shift is
    cancelled exactly by the affine-free InstanceNorm that follows each conv.
    This silently breaks if norm_layer is swapped (BatchNorm / affine IN).
    """
    C = w1.shape[0]
    dt = mxu_dtype if mxu_dtype is not None else w1.dtype
    m1 = block_diag(prepare_conv_mats(w1, W), lane_pack).astype(dt)
    m2 = block_diag(prepare_conv_mats(w2, W), lane_pack).astype(dt)
    avg = block_diag(channel_average_mat(C, W, H), lane_pack)   # stats stay f32
    return m1, m2, avg


# ---------------------------------------------------------------------------
# Wrappers
# ---------------------------------------------------------------------------
@functools.partial(jax.jit, static_argnames=("eps",))
def resnet_block_nhwc(x_nhwc, m1, m2, avg, *, eps=1e-5):
    """NHWC hot path: no transposes, weights already folded."""
    N, H, W, C = x_nhwc.shape
    WC = W * C
    L = avg.shape[-1]
    P = L // WC                      # images packed on the lane axis
    assert P * WC == L and N % P == 0
    NB = N // P

    # Pack P images side-by-side on lanes: x_flat[g, h, p*WC + w*C + c].
    x_flat = (x_nhwc.reshape(NB, P, H, W, C)
              .transpose(0, 2, 1, 3, 4)
              .reshape(NB, H, L))

    # 2 parallel blocks let v7x shard across its 2 TensorCores; on v5e/v6e the
    # one extra grid step costs ~0.35 us (negligible).  NB==1 -> single step.
    num_blocks = 2 if (NB >= 2 and NB % 2 == 0) else 1
    B = NB // num_blocks

    kernel = functools.partial(_resnet_block_kernel, H=H, eps=eps)

    out_flat = pl.pallas_call(
        kernel,
        out_shape=jax.ShapeDtypeStruct((NB, H, L), x_nhwc.dtype),
        grid_spec=pltpu.PrefetchScalarGridSpec(
            num_scalar_prefetch=0,
            grid=(num_blocks,),
            in_specs=[
                pl.BlockSpec((B, H, L), lambda g: (g, 0, 0)),
                # m1/m2/avg are grid-constant; at production L they should be
                # single-buffered (pipeline_mode) — negligible here (<1 MiB).
                pl.BlockSpec((3, L, L), lambda g: (0, 0, 0)),
                pl.BlockSpec((3, L, L), lambda g: (0, 0, 0)),
                pl.BlockSpec((L, L), lambda g: (0, 0)),
            ],
            out_specs=pl.BlockSpec((B, H, L), lambda g: (g, 0, 0)),
        ),
        compiler_params=pltpu.CompilerParams(
            dimension_semantics=("parallel",),          # megacore over batch blocks
            # Ample at these sizes; re-derive against v7x's 64 MiB (and raise on
            # v6e's 128 MiB) once L grows — folded weights scale as 3*L^2.
            vmem_limit_bytes=32 * 1024 * 1024,
        ),
    )(x_flat, m1, m2, avg)

    return (out_flat.reshape(NB, H, P, W, C)
            .transpose(0, 2, 1, 3, 4)
            .reshape(N, H, W, C))


def resnet_block_pallas(x_nchw, w1, b1, w2, b2, *, eps=1e-5, mxu_dtype=None):
    """PyTorch-interface convenience wrapper (NCHW / OIHW, biases accepted but
    unused — affine-free InstanceNorm cancels them).  In a real model keep
    activations NHWC and call prepare_resnet_block_params once at load time."""
    del b1, b2
    N, C, H, W = x_nchw.shape
    P = choose_lane_pack(N, W, C)
    m1, m2, avg = prepare_resnet_block_params(w1, w2, H=H, W=W, lane_pack=P,
                                              mxu_dtype=mxu_dtype)
    x_nhwc = jnp.transpose(x_nchw, (0, 2, 3, 1))
    y = resnet_block_nhwc(x_nhwc, m1, m2, avg, eps=eps)
    return jnp.transpose(y, (0, 3, 1, 2))


# ---------------------------------------------------------------------------
# Pure-JAX reference (mirrors the PyTorch module exactly, bias included)
# ---------------------------------------------------------------------------
def resnet_block_ref(x, w1, b1, w2, b2, *, eps=1e-5):
    def conv(a, w, b):
        a = jnp.pad(a, ((0, 0), (0, 0), (1, 1), (1, 1)), mode="reflect")
        y = jax.lax.conv_general_dilated(
            a, w, (1, 1), "VALID",
            dimension_numbers=("NCHW", "OIHW", "NCHW"))
        return y + b[None, :, None, None]

    def inorm(a):
        m = a.mean(axis=(2, 3), keepdims=True)
        v = ((a - m) ** 2).mean(axis=(2, 3), keepdims=True)
        return (a - m) * jax.lax.rsqrt(v + eps)

    h = conv(x, w1, b1)
    h = inorm(h)
    h = jnp.maximum(h, 0.0)
    h = conv(h, w2, b2)
    h = inorm(h)
    return x + h


if __name__ == "__main__":
    N, C, H, W = 2, 4, 16, 16

    key = jax.random.PRNGKey(0)
    kx, kw1, kb1, kw2, kb2 = jax.random.split(key, 5)

    x = jax.random.normal(kx, (N, C, H, W), dtype=jnp.float32)
    # PyTorch Conv2d(dim, dim, 3) shapes.
    w1 = jax.random.normal(kw1, (C, C, 3, 3), dtype=jnp.float32) * 0.1
    b1 = jax.random.normal(kb1, (C,), dtype=jnp.float32) * 0.1
    w2 = jax.random.normal(kw2, (C, C, 3, 3), dtype=jnp.float32) * 0.1
    b2 = jax.random.normal(kb2, (C,), dtype=jnp.float32) * 0.1

    # Hoisted path: fold the weights once (parameter-load time), keep the
    # activations NHWC around the kernel call.
    P = choose_lane_pack(N, W, C)                        # -> 2 (lane dim = 128)
    m1, m2, avg = prepare_resnet_block_params(w1, w2, H=H, W=W, lane_pack=P)
    x_nhwc = jnp.transpose(x, (0, 2, 3, 1))
    out_nhwc = jax.block_until_ready(resnet_block_nhwc(x_nhwc, m1, m2, avg))
    out = jnp.transpose(out_nhwc, (0, 3, 1, 2))

    ref = jax.block_until_ready(resnet_block_ref(x, w1, b1, w2, b2))

    assert out.shape == (N, C, H, W)
    err = jnp.max(jnp.abs(out - ref))
    assert jnp.allclose(out, ref, atol=1e-4, rtol=1e-4), f"max abs err {err}"

    print("KERNEL_OK")
</pallas_src>

<mosaic_0001>
module attributes {stable_mosaic.version = 11 : i64} {
  func.func @_resnet_block_kernel(%arg0: i32, %arg1: memref<1x16x128xf32, #tpu.memory_space<vmem>>, %arg2: memref<3x128x128xf32, #tpu.memory_space<vmem>>, %arg3: memref<3x128x128xf32, #tpu.memory_space<vmem>>, %arg4: memref<128x128xf32, #tpu.memory_space<vmem>>, %arg5: memref<1x16x128xf32, #tpu.memory_space<vmem>>) attributes {dimension_semantics = [#tpu.dimension_semantics<parallel>], iteration_bounds = array<i64: 1>, scalar_prefetch = 0 : i64, scratch_operands = 0 : i64, tpu.core_type = #tpu.core_type<tc>, window_params = [{transform_indices = @transform_0, window_bounds = array<i64: 1, 16, 128>}, {pipeline_mode = #tpu.pipeline_mode<synchronous>, transform_indices = @transform_1, window_bounds = array<i64: 3, 128, 128>}, {pipeline_mode = #tpu.pipeline_mode<synchronous>, transform_indices = @transform_2, window_bounds = array<i64: 3, 128, 128>}, {pipeline_mode = #tpu.pipeline_mode<synchronous>, transform_indices = @transform_3, window_bounds = array<i64: 128, 128>}, {transform_indices = @transform_4, window_bounds = array<i64: 1, 16, 128>}]} {
    %c0 = arith.constant 0 : index
    %c0_0 = arith.constant 0 : index
    %c0_1 = arith.constant 0 : index
    %0 = vector.load %arg1[%c0, %c0_0, %c0_1] : memref<1x16x128xf32, #tpu.memory_space<vmem>>, vector<1x16x128xf32>
    %1 = vector.shape_cast %0 : vector<1x16x128xf32> to vector<16x128xf32>
    %c0_2 = arith.constant 0 : index
    %c0_3 = arith.constant 0 : index
    %2 = vector.load %arg4[%c0_2, %c0_3] : memref<128x128xf32, #tpu.memory_space<vmem>>, vector<128x128xf32>
    %3 = tpu.iota {dimensions = array<i32: 0>} : vector<16x16xi32>
    %4 = tpu.iota {dimensions = array<i32: 1>} : vector<16x16xi32>
    %c16_i32 = arith.constant 16 : i32
    %c0_i32 = arith.constant 0 : i32
    %5 = arith.cmpi eq, %c16_i32, %c0_i32 : i32
    %c1_i32 = arith.constant 1 : i32
    %6 = arith.select %5, %c1_i32, %c16_i32 : i32
    %7 = vector.broadcast %6 : i32 to vector<16x16xi32>
    %8 = arith.remsi %3, %7 : vector<16x16xi32>
    %c0_i32_4 = arith.constant 0 : i32
    %9 = vector.broadcast %c0_i32_4 : i32 to vector<16x16xi32>
    %10 = arith.cmpi ne, %8, %9 : vector<16x16xi32>
    %c0_i32_5 = arith.constant 0 : i32
    %11 = vector.broadcast %c0_i32_5 : i32 to vector<16x16xi32>
    %12 = arith.cmpi slt, %8, %11 : vector<16x16xi32>
    %c0_i32_6 = arith.constant 0 : i32
    %13 = arith.cmpi slt, %6, %c0_i32_6 : i32
    %14 = vector.broadcast %13 : i1 to vector<16x16xi1>
    %15 = vector.broadcast %14 : vector<16x16xi1> to vector<16x16xi1>
    %16 = arith.xori %12, %15 : vector<16x16xi1>
    %17 = arith.andi %16, %10 : vector<16x16xi1>
    %18 = vector.broadcast %6 : i32 to vector<16x16xi32>
    %19 = arith.addi %8, %18 : vector<16x16xi32>
    %20 = arith.select %17, %19, %8 : vector<16x16xi1>, vector<16x16xi32>
    %c0_i32_7 = arith.constant 0 : i32
    %21 = vector.broadcast %c0_i32_7 : i32 to vector<16x16xi32>
    %22 = arith.cmpi eq, %20, %21 : vector<16x16xi32>
    %c1_i32_8 = arith.constant 1 : i32
    %23 = vector.broadcast %c1_i32_8 : i32 to vector<16x16xi32>
    %24 = arith.addi %3, %23 : vector<16x16xi32>
    %c1_i32_9 = arith.constant 1 : i32
    %25 = vector.broadcast %c1_i32_9 : i32 to vector<16x16xi32>
    %26 = arith.subi %3, %25 : vector<16x16xi32>
    %27 = arith.select %22, %24, %26 : vector<16x16xi1>, vector<16x16xi32>
    %28 = arith.cmpi eq, %4, %27 : vector<16x16xi32>
    %29 = arith.extui %28 : vector<16x16xi1> to vector<16x16xi32>
    %30 = arith.sitofp %29 : vector<16x16xi32> to vector<16x16xf32>
    %c15_i32 = arith.constant 15 : i32
    %31 = vector.broadcast %c15_i32 : i32 to vector<16x16xi32>
    %32 = arith.cmpi eq, %20, %31 : vector<16x16xi32>
    %c1_i32_10 = arith.constant 1 : i32
    %33 = vector.broadcast %c1_i32_10 : i32 to vector<16x16xi32>
    %34 = arith.subi %3, %33 : vector<16x16xi32>
    %c1_i32_11 = arith.constant 1 : i32
    %35 = vector.broadcast %c1_i32_11 : i32 to vector<16x16xi32>
    %36 = arith.addi %3, %35 : vector<16x16xi32>
    %37 = arith.select %32, %34, %36 : vector<16x16xi1>, vector<16x16xi32>
    %38 = arith.cmpi eq, %4, %37 : vector<16x16xi32>
    %39 = arith.extui %38 : vector<16x16xi1> to vector<16x16xi32>
    %40 = arith.sitofp %39 : vector<16x16xi32> to vector<16x16xf32>
    %c0_12 = arith.constant 0 : index
    %c0_13 = arith.constant 0 : index
    %c0_14 = arith.constant 0 : index
    %41 = vector.load %arg2[%c0_12, %c0_13, %c0_14] : memref<3x128x128xf32, #tpu.memory_space<vmem>>, vector<1x128x128xf32>
    %42 = vector.shape_cast %41 : vector<1x128x128xf32> to vector<128x128xf32>
    %cst = arith.constant dense<0.000000e+00> : vector<16x128xf32>
    %43 = tpu.matmul %1, %42, %cst {dimension_numbers = #tpu.dot_dimension_numbers<[1], [0], [0], [1], [0, 0, 1, 1], [], []>} : vector<16x128xf32>, vector<128x128xf32>, vector<16x128xf32> -> vector<16x128xf32>
    %c1 = arith.constant 1 : index
    %c0_15 = arith.constant 0 : index
    %c0_16 = arith.constant 0 : index
    %44 = vector.load %arg2[%c1, %c0_15, %c0_16] : memref<3x128x128xf32, #tpu.memory_space<vmem>>, vector<1x128x128xf32>
    %45 = vector.shape_cast %44 : vector<1x128x128xf32> to vector<128x128xf32>
    %cst_17 = arith.constant dense<0.000000e+00> : vector<16x128xf32>
    %46 = tpu.matmul %1, %45, %cst_17 {dimension_numbers = #tpu.dot_dimension_numbers<[1], [0], [0], [1], [0, 0, 1, 1], [], []>} : vector<16x128xf32>, vector<128x128xf32>, vector<16x128xf32> -> vector<16x128xf32>
    %c2 = arith.constant 2 : index
    %c0_18 = arith.constant 0 : index
    %c0_19 = arith.constant 0 : index
    %47 = vector.load %arg2[%c2, %c0_18, %c0_19] : memref<3x128x128xf32, #tpu.memory_space<vmem>>, vector<1x128x128xf32>
    %48 = vector.shape_cast %47 : vector<1x128x128xf32> to vector<128x128xf32>
    %cst_20 = arith.constant dense<0.000000e+00> : vector<16x128xf32>
    %49 = tpu.matmul %1, %48, %cst_20 {dimension_numbers = #tpu.dot_dimension_numbers<[1], [0], [0], [1], [0, 0, 1, 1], [], []>} : vector<16x128xf32>, vector<128x128xf32>, vector<16x128xf32> -> vector<16x128xf32>
    %cst_21 = arith.constant dense<0.000000e+00> : vector<16x128xf32>
    %50 = tpu.matmul %30, %43, %cst_21 {dimension_numbers = #tpu.dot_dimension_numbers<[1], [0], [0], [1], [0, 0, 1, 1], [], []>} : vector<16x16xf32>, vector<16x128xf32>, vector<16x128xf32> -> vector<16x128xf32>
    %51 = arith.addf %50, %46 : vector<16x128xf32>
    %cst_22 = arith.constant dense<0.000000e+00> : vector<16x128xf32>
    %52 = tpu.matmul %40, %49, %cst_22 {dimension_numbers = #tpu.dot_dimension_numbers<[1], [0], [0], [1], [0, 0, 1, 1], [], []>} : vector<16x16xf32>, vector<16x128xf32>, vector<16x128xf32> -> vector<16x128xf32>
    %53 = arith.addf %51, %52 : vector<16x128xf32>
    %54 = vector.shape_cast %53 : vector<16x128xf32> to vector<1x16x128xf32>
    %cst_23 = arith.constant dense<0.000000e+00> : vector<1x128xf32>
    %55 = vector.multi_reduction <add>, %54, %cst_23 [1] : vector<1x16x128xf32> to vector<1x128xf32>
    %cst_24 = arith.constant dense<0.000000e+00> : vector<1x128xf32>
    %56 = tpu.matmul %55, %2, %cst_24 {dimension_numbers = #tpu.dot_dimension_numbers<[1], [0], [0], [1], [0, 0, 1, 1], [], []>} : vector<1x128xf32>, vector<128x128xf32>, vector<1x128xf32> -> vector<1x128xf32>
    %57 = vector.shape_cast %56 : vector<1x128xf32> to vector<1x1x128xf32>
    %58 = vector.broadcast %57 : vector<1x1x128xf32> to vector<1x16x128xf32>
    %59 = arith.subf %54, %58 : vector<1x16x128xf32>
    %60 = arith.mulf %59, %59 : vector<1x16x128xf32>
    %cst_25 = arith.constant dense<0.000000e+00> : vector<1x128xf32>
    %61 = vector.multi_reduction <add>, %60, %cst_25 [1] : vector<1x16x128xf32> to vector<1x128xf32>
    %cst_26 = arith.constant dense<0.000000e+00> : vector<1x128xf32>
    %62 = tpu.matmul %61, %2, %cst_26 {dimension_numbers = #tpu.dot_dimension_numbers<[1], [0], [0], [1], [0, 0, 1, 1], [], []>} : vector<1x128xf32>, vector<128x128xf32>, vector<1x128xf32> -> vector<1x128xf32>
    %cst_27 = arith.constant 9.99999974E-6 : f32
    %63 = vector.broadcast %cst_27 : f32 to vector<1x128xf32>
    %64 = arith.addf %62, %63 : vector<1x128xf32>
    %65 = math.rsqrt %64 : vector<1x128xf32>
    %66 = vector.shape_cast %65 : vector<1x128xf32> to vector<1x1x128xf32>
    %67 = vector.broadcast %66 : vector<1x1x128xf32> to vector<1x16x128xf32>
    %68 = arith.mulf %59, %67 : vector<1x16x128xf32>
    %69 = vector.shape_cast %68 : vector<1x16x128xf32> to vector<16x128xf32>
    %cst_28 = arith.constant 0.000000e+00 : f32
    %70 = vector.broadcast %cst_28 : f32 to vector<16x128xf32>
    %71 = arith.maximumf %69, %70 : vector<16x128xf32>
    %c0_29 = arith.constant 0 : index
    %c0_30 = arith.constant 0 : index
    %c0_31 = arith.constant 0 : index
    %72 = vector.load %arg3[%c0_29, %c0_30, %c0_31] : memref<3x128x128xf32, #tpu.memory_space<vmem>>, vector<1x128x128xf32>
    %73 = vector.shape_cast %72 : vector<1x128x128xf32> to vector<128x128xf32>
    %cst_32 = arith.constant dense<0.000000e+00> : vector<16x128xf32>
    %74 = tpu.matmul %71, %73, %cst_32 {dimension_numbers = #tpu.dot_dimension_numbers<[1], [0], [0], [1], [0, 0, 1, 1], [], []>} : vector<16x128xf32>, vector<128x128xf32>, vector<16x128xf32> -> vector<16x128xf32>
    %c1_33 = arith.constant 1 : index
    %c0_34 = arith.constant 0 : index
    %c0_35 = arith.constant 0 : index
    %75 = vector.load %arg3[%c1_33, %c0_34, %c0_35] : memref<3x128x128xf32, #tpu.memory_space<vmem>>, vector<1x128x128xf32>
    %76 = vector.shape_cast %75 : vector<1x128x128xf32> to vector<128x128xf32>
    %cst_36 = arith.constant dense<0.000000e+00> : vector<16x128xf32>
    %77 = tpu.matmul %71, %76, %cst_36 {dimension_numbers = #tpu.dot_dimension_numbers<[1], [0], [0], [1], [0, 0, 1, 1], [], []>} : vector<16x128xf32>, vector<128x128xf32>, vector<16x128xf32> -> vector<16x128xf32>
    %c2_37 = arith.constant 2 : index
    %c0_38 = arith.constant 0 : index
    %c0_39 = arith.constant 0 : index
    %78 = vector.load %arg3[%c2_37, %c0_38, %c0_39] : memref<3x128x128xf32, #tpu.memory_space<vmem>>, vector<1x128x128xf32>
    %79 = vector.shape_cast %78 : vector<1x128x128xf32> to vector<128x128xf32>
    %cst_40 = arith.constant dense<0.000000e+00> : vector<16x128xf32>
    %80 = tpu.matmul %71, %79, %cst_40 {dimension_numbers = #tpu.dot_dimension_numbers<[1], [0], [0], [1], [0, 0, 1, 1], [], []>} : vector<16x128xf32>, vector<128x128xf32>, vector<16x128xf32> -> vector<16x128xf32>
    %cst_41 = arith.constant dense<0.000000e+00> : vector<16x128xf32>
    %81 = tpu.matmul %30, %74, %cst_41 {dimension_numbers = #tpu.dot_dimension_numbers<[1], [0], [0], [1], [0, 0, 1, 1], [], []>} : vector<16x16xf32>, vector<16x128xf32>, vector<16x128xf32> -> vector<16x128xf32>
    %82 = arith.addf %81, %77 : vector<16x128xf32>
    %cst_42 = arith.constant dense<0.000000e+00> : vector<16x128xf32>
    %83 = tpu.matmul %40, %80, %cst_42 {dimension_numbers = #tpu.dot_dimension_numbers<[1], [0], [0], [1], [0, 0, 1, 1], [], []>} : vector<16x16xf32>, vector<16x128xf32>, vector<16x128xf32> -> vector<16x128xf32>
    %84 = arith.addf %82, %83 : vector<16x128xf32>
    %85 = vector.shape_cast %84 : vector<16x128xf32> to vector<1x16x128xf32>
    %cst_43 = arith.constant dense<0.000000e+00> : vector<1x128xf32>
    %86 = vector.multi_reduction <add>, %85, %cst_43 [1] : vector<1x16x128xf32> to vector<1x128xf32>
    %cst_44 = arith.constant dense<0.000000e+00> : vector<1x128xf32>
    %87 = tpu.matmul %86, %2, %cst_44 {dimension_numbers = #tpu.dot_dimension_numbers<[1], [0], [0], [1], [0, 0, 1, 1], [], []>} : vector<1x128xf32>, vector<128x128xf32>, vector<1x128xf32> -> vector<1x128xf32>
    %88 = vector.shape_cast %87 : vector<1x128xf32> to vector<1x1x128xf32>
    %89 = vector.broadcast %88 : vector<1x1x128xf32> to vector<1x16x128xf32>
    %90 = arith.subf %85, %89 : vector<1x16x128xf32>
    %91 = arith.mulf %90, %90 : vector<1x16x128xf32>
    %cst_45 = arith.constant dense<0.000000e+00> : vector<1x128xf32>
    %92 = vector.multi_reduction <add>, %91, %cst_45 [1] : vector<1x16x128xf32> to vector<1x128xf32>
    %cst_46 = arith.constant dense<0.000000e+00> : vector<1x128xf32>
    %93 = tpu.matmul %92, %2, %cst_46 {dimension_numbers = #tpu.dot_dimension_numbers<[1], [0], [0], [1], [0, 0, 1, 1], [], []>} : vector<1x128xf32>, vector<128x128xf32>, vector<1x128xf32> -> vector<1x128xf32>
    %cst_47 = arith.constant 9.99999974E-6 : f32
    %94 = vector.broadcast %cst_47 : f32 to vector<1x128xf32>
    %95 = arith.addf %93, %94 : vector<1x128xf32>
    %96 = math.rsqrt %95 : vector<1x128xf32>
    %97 = vector.shape_cast %96 : vector<1x128xf32> to vector<1x1x128xf32>
    %98 = vector.broadcast %97 : vector<1x1x128xf32> to vector<1x16x128xf32>
    %99 = arith.mulf %90, %98 : vector<1x16x128xf32>
    %100 = vector.shape_cast %99 : vector<1x16x128xf32> to vector<16x128xf32>
    %101 = arith.addf %1, %100 : vector<16x128xf32>
    %102 = vector.shape_cast %101 : vector<16x128xf32> to vector<1x16x128xf32>
    %c0_48 = arith.constant 0 : index
    %c0_49 = arith.constant 0 : index
    %c0_50 = arith.constant 0 : index
    %103 = vector.load %arg5[%c0_48, %c0_49, %c0_50] : memref<1x16x128xf32, #tpu.memory_space<vmem>>, vector<1x16x128xf32>
    tpu.vector_store %arg5[%c0_48, %c0_49, %c0_50], %102 {strides = array<i32>} : memref<1x16x128xf32, #tpu.memory_space<vmem>>, vector<1x16x128xf32>,
    return
  }
  func.func @transform_0(%arg0: i32) -> (i32, i32, i32) {
    %c0_i32 = arith.constant 0 : i32
    %c0_i32_0 = arith.constant 0 : i32
    %c0_i32_1 = arith.constant 0 : i32
    return %arg0, %c0_i32, %c0_i32_0 : i32, i32, i32
  }
  func.func @transform_1(%arg0: i32) -> (i32, i32, i32) {
    %c0_i32 = arith.constant 0 : i32
    %c0_i32_0 = arith.constant 0 : i32
    %c0_i32_1 = arith.constant 0 : i32
    %c0_i32_2 = arith.constant 0 : i32
    return %c0_i32, %c0_i32_0, %c0_i32_1 : i32, i32, i32
  }
  func.func @transform_2(%arg0: i32) -> (i32, i32, i32) {
    %c0_i32 = arith.constant 0 : i32
    %c0_i32_0 = arith.constant 0 : i32
    %c0_i32_1 = arith.constant 0 : i32
    %c0_i32_2 = arith.constant 0 : i32
    return %c0_i32, %c0_i32_0, %c0_i32_1 : i32, i32, i32
  }
  func.func @transform_3(%arg0: i32) -> (i32, i32) {
    %c0_i32 = arith.constant 0 : i32
    %c0_i32_0 = arith.constant 0 : i32
    %c0_i32_1 = arith.constant 0 : i32
    return %c0_i32, %c0_i32_0 : i32, i32
  }
  func.func @transform_4(%arg0: i32) -> (i32, i32, i32) {
    %c0_i32 = arith.constant 0 : i32
    %c0_i32_0 = arith.constant 0 : i32
    %c0_i32_1 = arith.constant 0 : i32
    return %arg0, %c0_i32, %c0_i32_0 : i32, i32, i32
  }
}

</mosaic_0001>

<bundles_post_ra>
// kernel: resnet_block_nhwc.1
= control target key start
LH: loop header
LB: loop body
LE: loop exit
PB: predicated region body
PF: predicated region fallthrough
CT: control target
= control target key end

     0   :  { %9 = vsyncpa [#allocation3], 0  ;;  %s2433_s0 = inlined_call_operand.vmem [shape: f32[1,16,128], index: 0, kind: input, shape index: {}]   ;;  %s2434_s1 = inlined_call_operand.vmem [shape: f32[3,128,128], index: 1, kind: input, shape index: {}]   ;;  %s2435_s2 = inlined_call_operand.hbm [shape: f32[3,128,128], index: 2, kind: input, shape index: {}]   ;;  %s2436_s3 = inlined_call_operand.hbm [shape: f32[128,128], index: 3, kind: input, shape index: {}]   ;;  %s2437_s4 = inlined_call_operand.vmem [shape: f32[1,16,128], index: 4, kind: output, shape index: {}]  }
   0x1   :  { %10 = vsyncpa [#allocation5], 0  ;;  %s2005_s15 = smov [#allocation2]  }
   0x2   :  { %s20_s16 = sshll.u32 %s2005_s15, 4  ;;  %s21_s16 = int_to_ptr.vmem [resolvable:$true] %s20_s16 }
   0x3   :  { %s1969_s17 = scalar_lea.vmem %s21_s16, 6144  ;;  %p1974_p1 = scmp.lt.s32.totalorder %s21_s16, %s21_s16 }
   0x4   :  { %p1970_p0 = scmp.ne.s32.totalorder %s21_s16, %s1969_s17  ;;  %p1975_p2 = scmp.lt.s32.totalorder %s1969_s17, %s1969_s17 }
   0x6   :  { %p1976_p3 = por %p1975_p2, %p1974_p1 }
   0x8   :  { %p1977_p4 = pnand %p1976_p3, %p1970_p0 }
   0xa   :  { %1980 = shalt.err (!%p1977_p4)
}
   0xb   :  { %s2006_s18 = smov 128   ;;  %s2007_s19 = smov 8  }
   0xc   :  { %26 = dma.hbm_to_vmem [thread:$0]  %s2435_s2, 6144, %s21_s16, [#allocation3], %s2006_s18, %s2006_s18, %s2007_s19  }
   0xd   :  { %s2008_s22 = smov [#allocation4]  }
   0xe   :  { %s32_s23 = sshll.u32 %s2008_s22, 4  ;;  %s33_s23 = int_to_ptr.vmem [resolvable:$true] %s32_s23 }
   0xf   :  { %s1989_s24 = scalar_lea.vmem %s33_s23, 2048  ;;  %p1994_p6 = scmp.lt.s32.totalorder %s33_s23, %s33_s23 }
  0x10   :  { %p1990_p5 = scmp.ne.s32.totalorder %s33_s23, %s1989_s24  ;;  %p1995_p7 = scmp.lt.s32.totalorder %s1989_s24, %s1989_s24 }
  0x12   :  { %p1996_p8 = por %p1995_p7, %p1994_p6 }
  0x14   :  { %p1997_p9 = pnand %p1996_p8, %p1990_p5 }
  0x16   :  { %2000 = shalt.err (!%p1997_p9)
}
  0x17   :  { %38 = dma.hbm_to_vmem [thread:$0]  %s2436_s3, 2048, %s33_s23, [#allocation5], %s2006_s18, %s2006_s18, %s2007_s19  }
  0x18   :  { %2001 = dma.done.wait [#allocation3], 6144  }
  0x19   :  { %2002 = vsyncadd [#allocation3], 4294961152 }
  0x1a   :  { %2003 = dma.done.wait [#allocation5], 2048  }
  0x1b   :  { %2004 = vsyncadd [#allocation5], 4294965248  ;;  %v131_v0 = vld [vmem:[%s2434_s1 + $0x78] sm:$0xff]  ;;  %v130_v1 = vld [vmem:[%s2434_s1 + $0x70] sm:$0xff]  ;;  %v63_v50 = vlaneseq  ;;  %v2009_v51 = vmov 0.0   ;;  %vm391_vm1 = vcmask 130048  }
  0x1c   :  { %1571 = vmatprep.subr.mxu0 %v131_v0  ;;  %v129_v2 = vld [vmem:[%s2434_s1 + $0x68] sm:$0xff]  ;;  %v128_v3 = vld [vmem:[%s2434_s1 + $0x60] sm:$0xff]  ;;  %v127_v5 = vld [vmem:[%s2434_s1 + $0x58] sm:$0xff]  ;;  %vm2010_vm7 = vmmov 0  }
  0x1d   :  { %1572 = vmatpush3.msra.mxu0 %v131_v0  ;;  %v2057_v4 = vld [vmem:[%s2433_s0] sm:$0xff]  ;;  %v126_v6 = vld [vmem:[%s2434_s1 + $0x50] sm:$0xff]  ;;  %v125_v7 = vld [vmem:[%s2434_s1 + $0x48] sm:$0xff]  ;;  %v2203_v52 = vshrl.u32 %v63_v50, 7  ;;  %v67_v53 = vand.u32 127, %v63_v50 }
  0x1e   :  { %1573 = vmatprep.subr.mxu0 %v130_v1  ;;  %1603 = vmatprep.mubr.f32.mxu0 %v2057_v4  ;;  %v1354_v8 = vld [vmem:[%s2434_s1 + $0xf8] sm:$0xff]  ;;  %v1353_v9 = vld [vmem:[%s2434_s1 + $0xf0] sm:$0xff]  ;;  %v124_v10 = vld [vmem:[%s2434_s1 + $0x40] sm:$0xff] }
  0x1f   :  { %1574 = vmatpush3.msra.mxu0 %v130_v1  ;;  %1638 = vmatprep.mubr.f32.mxu1 %v2057_v4  ;;  %v1352_v11 = vld [vmem:[%s2434_s1 + $0xe8] sm:$0xff]  ;;  %v123_v12 = vld [vmem:[%s2434_s1 + $0x38] sm:$0xff]  ;;  %v1351_v13 = vld [vmem:[%s2434_s1 + $0xe0] sm:$0xff]  ;;  %v72_v54 = vand.u32 15, %v2203_v52  ;;  %v94_v55 = vadd.s32 1, %v2203_v52  ;;  %v1333_v56 = vadd.s32 4294967295, %v2203_v52 }
  0x20   :  { %1575 = vmatprep.subr.mxu0 %v129_v2  ;;  %1606 = vmatprep.subr.mxu1 %v1354_v8  ;;  %v122_v14 = vld [vmem:[%s2434_s1 + $0x30] sm:$0xff]  ;;  %v1350_v15 = vld [vmem:[%s2434_s1 + $0xd8] sm:$0xff]  ;;  %v121_v16 = vld [vmem:[%s2434_s1 + $0x28] sm:$0xff]  ;;  %v65_v60 = vadd.s32 8, %v2203_v52 }
  0x21   :  { %1576 = vmatpush3.msra.mxu0 %v129_v2  ;;  %1607 = vmatpush3.msra.mxu1 %v1354_v8  ;;  %v1349_v17 = vld [vmem:[%s2434_s1 + $0xd0] sm:$0xff]  ;;  %v120_v18 = vld [vmem:[%s2434_s1 + $0x20] sm:$0xff]  ;;  %v1348_v19 = vld [vmem:[%s2434_s1 + $0xc8] sm:$0xff]  ;;  %vm92_vm0 = vcmp.eq.s32.totalorder %v72_v54, 0  ;;  %vm110_vm3 = vcmp.eq.s32.totalorder %v67_v53, %v94_v55 }
  0x22   :  { %1577 = vmatprep.subr.mxu0 %v128_v3  ;;  %1608 = vmatprep.subr.mxu1 %v1353_v9  ;;  %v119_v20 = vld [vmem:[%s2434_s1 + $0x18] sm:$0xff]  ;;  %v1347_v21 = vld [vmem:[%s2434_s1 + $0xc0] sm:$0xff]  ;;  %v118_v22 = vld [vmem:[%s2434_s1 + $0x10] sm:$0xff]  ;;  %v98_v57 = vsel %vm92_vm0, %v94_v55, %v1333_v56  ;;  %v1334_v61 = vadd.s32 4294967295, %v65_v60  ;;  %v2222_v1 = vsel %vm110_vm3, 1.0, %v2009_v51  ;;  %v79_v2 = vand.u32 15, %v65_v60 }
  0x23   :  { %1578 = vmatpush3.msra.mxu0 %v128_v3  ;;  %1609 = vmatpush3.msra.mxu1 %v1353_v9  ;;  %v1346_v23 = vld [vmem:[%s2434_s1 + $0xb8] sm:$0xff]  ;;  %v117_v24 = vld [vmem:[%s2434_s1 + $0x8] sm:$0xff]  ;;  %v1345_v25 = vld [vmem:[%s2434_s1 + $0xb0] sm:$0xff]  ;;  %vm100_vm2 = vcmp.eq.s32.totalorder %v67_v53, %v98_v57  ;;  %v95_v3 = vadd.s32 1, %v65_v60 }
  0x24   :  { %1579 = vmatprep.subr.mxu0 %v127_v5  ;;  %1610 = vmatprep.subr.mxu1 %v1352_v11  ;;  %v116_v26 = vld [vmem:[%s2434_s1] sm:$0xff]  ;;  %v1344_v27 = vld [vmem:[%s2434_s1 + $0xa8] sm:$0xff]  ;;  %v1370_v29 = vld [vmem:[%s2434_s1 + $0x178] sm:$0xff]  ;;  %v2209_v58 = vsel %vm100_vm2, 1.0, %v2009_v51  ;;  %vm101_vm4 = vcmp.eq.s32.totalorder %v67_v53, %v1334_v61  ;;  %vm107_vm5 = vcmp.eq.s32.totalorder %v79_v2, 15 }
  0x25   :  { %1580 = vmatpush3.msra.mxu0 %v127_v5  ;;  %1611 = vmatpush3.msra.mxu1 %v1352_v11  ;;  %v2133_v28 = vld [vmem:[%s2433_s0 + $0x8] sm:$0xff]  ;;  %v1369_v30 = vld [vmem:[%s2434_s1 + $0x170] sm:$0xff]  ;;  %v1343_v31 = vld [vmem:[%s2434_s1 + $0xa0] sm:$0xff]  ;;  %v2219_v0 = vsel %vm101_vm4, 1.0, %v2009_v51 }
  0x26   :  { %1581 = vmatprep.subr.mxu0 %v126_v6  ;;  %1612 = vmatprep.subr.mxu1 %v1351_v13  ;;  %v1368_v32 = vld [vmem:[%s2434_s1 + $0x168] sm:$0xff]  ;;  %v1342_v33 = vld [vmem:[%s2434_s1 + $0x98] sm:$0xff]  ;;  %v1367_v34 = vld [vmem:[%s2434_s1 + $0x160] sm:$0xff] }
  0x27   :  { %1582 = vmatpush3.msra.mxu0 %v126_v6  ;;  %1613 = vmatpush3.msra.mxu1 %v1351_v13  ;;  %v1341_v35 = vld [vmem:[%s2434_s1 + $0x90] sm:$0xff]  ;;  %v1366_v36 = vld [vmem:[%s2434_s1 + $0x158] sm:$0xff]  ;;  %v1340_v37 = vld [vmem:[%s2434_s1 + $0x88] sm:$0xff] }
  0x28   :  { %1583 = vmatprep.subr.mxu0 %v125_v7  ;;  %1614 = vmatprep.subr.mxu1 %v1350_v15  ;;  %v1365_v38 = vld [vmem:[%s2434_s1 + $0x150] sm:$0xff]  ;;  %v1339_v39 = vld [vmem:[%s2434_s1 + $0x80] sm:$0xff]  ;;  %v1364_v40 = vld [vmem:[%s2434_s1 + $0x148] sm:$0xff] }
  0x29   :  { %1584 = vmatpush3.msra.mxu0 %v125_v7  ;;  %1615 = vmatpush3.msra.mxu1 %v1350_v15  ;;  %v1363_v41 = vld [vmem:[%s2434_s1 + $0x140] sm:$0xff]  ;;  %v1362_v42 = vld [vmem:[%s2434_s1 + $0x138] sm:$0xff]  ;;  %v1361_v43 = vld [vmem:[%s2434_s1 + $0x130] sm:$0xff] }
  0x2a   :  { %1585 = vmatprep.subr.mxu0 %v124_v10  ;;  %1616 = vmatprep.subr.mxu1 %v1349_v17  ;;  %v1360_v44 = vld [vmem:[%s2434_s1 + $0x128] sm:$0xff]  ;;  %v1359_v45 = vld [vmem:[%s2434_s1 + $0x120] sm:$0xff]  ;;  %v1358_v46 = vld [vmem:[%s2434_s1 + $0x118] sm:$0xff] }
  0x2b   :  { %1586 = vmatpush3.msra.mxu0 %v124_v10  ;;  %1617 = vmatpush3.msra.mxu1 %v1349_v17  ;;  %v1357_v47 = vld [vmem:[%s2434_s1 + $0x110] sm:$0xff]  ;;  %v1356_v48 = vld [vmem:[%s2434_s1 + $0x108] sm:$0xff]  ;;  %v1355_v49 = vld [vmem:[%s2434_s1 + $0x100] sm:$0xff] }
  0x2c   :  { %1587 = vmatprep.subr.mxu0 %v123_v12  ;;  %1618 = vmatprep.subr.mxu1 %v1348_v19  ;;  %v2213_v59 = vld [vmem:[#allocation4 + $0x78] sm:$0xff]  ;;  %v2236_v8 = vld [vmem:[#allocation4 + $0x70] sm:$0xff]  ;;  %v2241_v9 = vld [vmem:[#allocation4 + $0x68] sm:$0xff] }
  0x2d   :  { %1588 = vmatpush3.msra.mxu0 %v123_v12  ;;  %1619 = vmatpush3.msra.mxu1 %v1348_v19  ;;  %v2243_v10 = vld [vmem:[#allocation4 + $0x60] sm:$0xff]  ;;  %v2249_v11 = vld [vmem:[#allocation4 + $0x58] sm:$0xff]  ;;  %v2255_v12 = vld [vmem:[#allocation4 + $0x50] sm:$0xff] }
  0x2e   :  { %1589 = vmatprep.subr.mxu0 %v122_v14  ;;  %1620 = vmatprep.subr.mxu1 %v1347_v21  ;;  %v2266_v13 = vld [vmem:[#allocation4 + $0x48] sm:$0xff]  ;;  %v2277_v15 = vld [vmem:[#allocation4 + $0x38] sm:$0xff]  ;;  %v833_v2 = vld [vmem:[#allocation2 + $0xf0] sm:$0xff] }
  0x2f   :  { %1590 = vmatpush3.msra.mxu0 %v122_v14  ;;  %1621 = vmatpush3.msra.mxu1 %v1347_v21  ;;  %v2271_v14 = vld [vmem:[#allocation4 + $0x40] sm:$0xff]  ;;  %v2289_v17 = vld [vmem:[#allocation4 + $0x28] sm:$0xff]  ;;  %v2301_v19 = vld [vmem:[#allocation4 + $0x18] sm:$0xff] }
  0x30   :  { %1591 = vmatprep.subr.mxu0 %v121_v16  ;;  %1622 = vmatprep.subr.mxu1 %v1346_v23  ;;  %v2313_v21 = vld [vmem:[#allocation4 + $0x8] sm:$0xff] }
  0x31   :  { %1592 = vmatpush3.msra.mxu0 %v121_v16  ;;  %1623 = vmatpush3.msra.mxu1 %v1346_v23  ;;  %v2283_v16 = vld [vmem:[#allocation4 + $0x30] sm:$0xff] }
  0x32   :  { %1593 = vmatprep.subr.mxu0 %v120_v18  ;;  %1624 = vmatprep.subr.mxu1 %v1345_v25 }
  0x33   :  { %1594 = vmatpush3.msra.mxu0 %v120_v18  ;;  %1625 = vmatpush3.msra.mxu1 %v1345_v25  ;;  %v2295_v18 = vld [vmem:[#allocation4 + $0x20] sm:$0xff] }
  0x34   :  { %1595 = vmatprep.subr.mxu0 %v119_v20  ;;  %1626 = vmatprep.subr.mxu1 %v1344_v27 }
  0x35   :  { %1596 = vmatpush3.msra.mxu0 %v119_v20  ;;  %1627 = vmatpush3.msra.mxu1 %v1344_v27  ;;  %v2307_v20 = vld [vmem:[#allocation4 + $0x10] sm:$0xff] }
  0x36   :  { %1597 = vmatprep.subr.mxu0 %v118_v22  ;;  %1628 = vmatprep.subr.mxu1 %v1343_v31 }
  0x37   :  { %1598 = vmatpush3.msra.mxu0 %v118_v22  ;;  %1629 = vmatpush3.msra.mxu1 %v1343_v31  ;;  %v2315_v22 = vld [vmem:[#allocation4] sm:$0xff] }
  0x38   :  { %1599 = vmatprep.subr.mxu0 %v117_v24  ;;  %1630 = vmatprep.subr.mxu1 %v1342_v33 }
  0x39   :  { %1600 = vmatpush3.msra.mxu0 %v117_v24  ;;  %1631 = vmatpush3.msra.mxu1 %v1342_v33 }
  0x3a   :  { %1601 = vmatprep.subr.mxu0 %v116_v26  ;;  %1632 = vmatprep.subr.mxu1 %v1341_v35 }
  0x3b   :  { %1602 = vmatpush3.msra.mxu0 %v116_v26  ;;  %1633 = vmatpush3.msra.mxu1 %v1341_v35 }
  0x3c   :  { %1604 = vmatmul.mubr.f32.vlgmr.msra.gmra.mxu0 %v2133_v28  ;;  %1641 = vmatprep.subr.mxu0 %v1370_v29 }
  0x3d   :  { %1642 = vmatpush3.msra.mxu0 %v1370_v29  ;;  %1673 = vmatprep.mubr.f32.mxu0 %v2057_v4  ;;  %v109_v4 = vsel %vm107_vm5, %v1334_v61, %v95_v3  ;;  %v832_v3 = vld [vmem:[#allocation2 + $0xe8] sm:$0xff] }
  0x3e   :  { %1643 = vmatprep.subr.mxu0 %v1369_v30  ;;  %1634 = vmatprep.subr.mxu1 %v1340_v37  ;;  %vm111_vm6 = vcmp.eq.s32.totalorder %v67_v53, %v109_v4  ;;  %v831_v4 = vld [vmem:[#allocation2 + $0xe0] sm:$0xff] }
  0x3f   :  { %1644 = vmatpush3.msra.mxu0 %v1369_v30  ;;  %1635 = vmatpush3.msra.mxu1 %v1340_v37  ;;  %v2229_v7 = vsel %vm111_vm6, 1.0, %v2009_v51 }
  0x40   :  { %1645 = vmatprep.subr.mxu0 %v1368_v32  ;;  %1636 = vmatprep.subr.mxu1 %v1339_v39 }
  0x41   :  { %1646 = vmatpush3.msra.mxu0 %v1368_v32  ;;  %1637 = vmatpush3.msra.mxu1 %v1339_v39 }
  0x42   :  { %1647 = vmatprep.subr.mxu0 %v1367_v34  ;;  %1639 = vmatmul.mubr.f32.vlgmr.msra.gmra.mxu1 %v2133_v28 }
  0x43   :  { %1648 = vmatpush3.msra.mxu0 %v1367_v34  ;;  %1680 = vmatprep.mubr.msk.f32.mxu1 %vm391_vm1, %v2209_v58 }
  0x44   :  { %1649 = vmatprep.subr.mxu0 %v1366_v36 }
  0x45   :  { %1650 = vmatpush3.msra.mxu0 %v1366_v36 }
  0x46   :  { %1651 = vmatprep.subr.mxu0 %v1365_v38 }
  0x47   :  { %1652 = vmatpush3.msra.mxu0 %v1365_v38 }
  0x48   :  { %1653 = vmatprep.subr.mxu0 %v1364_v40 }
  0x49   :  { %1654 = vmatpush3.msra.mxu0 %v1364_v40  ;;  %v742_v40 = vld [vmem:[#allocation2 + $0x78] sm:$0xff] }
  0x4a   :  { %1655 = vmatprep.subr.mxu0 %v1363_v41 }
  0x4b   :  { %1656 = vmatpush3.msra.mxu0 %v1363_v41  ;;  %v834_v41 = vld [vmem:[#allocation2 + $0xf8] sm:$0xff] }
  0x4c   :  { %1657 = vmatprep.subr.mxu0 %v1362_v42 }
  0x4d   :  { %1658 = vmatpush3.msra.mxu0 %v1362_v42  ;;  %v741_v42 = vld [vmem:[#allocation2 + $0x70] sm:$0xff] }
  0x4e   :  { %1659 = vmatprep.subr.mxu0 %v1361_v43 }
  0x4f   :  { %1660 = vmatpush3.msra.mxu0 %v1361_v43  ;;  %v740_v43 = vld [vmem:[#allocation2 + $0x68] sm:$0xff] }
  0x50   :  { %1661 = vmatprep.subr.mxu0 %v1360_v44 }
  0x51   :  { %1662 = vmatpush3.msra.mxu0 %v1360_v44  ;;  %v739_v44 = vld [vmem:[#allocation2 + $0x60] sm:$0xff] }
  0x52   :  { %1663 = vmatprep.subr.mxu0 %v1359_v45 }
  0x53   :  { %1664 = vmatpush3.msra.mxu0 %v1359_v45  ;;  %v738_v45 = vld [vmem:[#allocation2 + $0x58] sm:$0xff] }
  0x54   :  { %1665 = vmatprep.subr.mxu0 %v1358_v46 }
  0x55   :  { %1666 = vmatpush3.msra.mxu0 %v1358_v46  ;;  %v2329_v46 = vsub.s32 0, %v2203_v52 }
  0x56   :  { %1667 = vmatprep.subr.mxu0 %v1357_v47 }
  0x57   :  { %1668 = vmatpush3.msra.mxu0 %v1357_v47 }
  0x58   :  { %1669 = vmatprep.subr.mxu0 %v1356_v48 }
  0x59   :  { %1670 = vmatpush3.msra.mxu0 %v1356_v48 }
  0x5a   :  { %1671 = vmatprep.subr.mxu0 %v1355_v49 }
  0x5b   :  { %1672 = vmatpush3.msra.mxu0 %v1355_v49 }
  0x5c   :  { %1674 = vmatmul.mubr.f32.vlgmr.msra.gmra.mxu0 %v2133_v28  ;;  %1725 = vmatprep.subr.mxu0 %v2009_v51 }
  0x5d   :  { %1726 = vmatpush3.msra.mxu0 %v2213_v59  ;;  %1757 = vmatprep.mubr.msk.f32.mxu0 %vm2010_vm7, %v2009_v51 }
  0x5e   :  { %1727 = vmatprep.subr.mxu0 %v2009_v51 }
  0x5f   :  { %1728 = vmatpush3.msra.mxu0 %v2236_v8 }
  0x60   :  { %1729 = vmatprep.subr.mxu0 %v2009_v51 }
  0x61   :  { %1730 = vmatpush3.msra.mxu0 %v2241_v9 }
  0x62   :  { %1731 = vmatprep.subr.mxu0 %v2009_v51 }
  0x63   :  { %1732 = vmatpush3.msra.mxu0 %v2243_v10 }
  0x64   :  { %1733 = vmatprep.subr.mxu0 %v2009_v51 }
  0x65   :  { %1734 = vmatpush3.msra.mxu0 %v2249_v11 }
  0x66   :  { %1735 = vmatprep.subr.mxu0 %v2009_v51 }
  0x67   :  { %1736 = vmatpush3.msra.mxu0 %v2255_v12 }
  0x68   :  { %1737 = vmatprep.subr.mxu0 %v2009_v51 }
  0x69   :  { %1738 = vmatpush3.msra.mxu0 %v2266_v13 }
  0x6a   :  { %1739 = vmatprep.subr.mxu0 %v2009_v51 }
  0x6b   :  { %1740 = vmatpush3.msra.mxu0 %v2271_v14 }
  0x6c   :  { %1741 = vmatprep.subr.mxu0 %v2009_v51 }
  0x6d   :  { %1742 = vmatpush3.msra.mxu0 %v2277_v15 }
  0x6e   :  { %1743 = vmatprep.subr.mxu0 %v2009_v51 }
  0x6f   :  { %1744 = vmatpush3.msra.mxu0 %v2283_v16 }
  0x70   :  { %1745 = vmatprep.subr.mxu0 %v2009_v51 }
  0x71   :  { %1746 = vmatpush3.msra.mxu0 %v2289_v17 }
  0x72   :  { %1747 = vmatprep.subr.mxu0 %v2009_v51 }
  0x73   :  { %1748 = vmatpush3.msra.mxu0 %v2295_v18 }
  0x74   :  { %1749 = vmatprep.subr.mxu0 %v2009_v51 }
  0x75   :  { %1750 = vmatpush3.msra.mxu0 %v2301_v19 }
  0x76   :  { %1751 = vmatprep.subr.mxu0 %v2009_v51 }
  0x77   :  { %1752 = vmatpush3.msra.mxu0 %v2307_v20 }
  0x78   :  { %1753 = vmatprep.subr.mxu0 %v2009_v51 }
  0x79   :  { %1754 = vmatpush3.msra.mxu0 %v2313_v21 }
  0x7a   :  { %1755 = vmatprep.subr.mxu0 %v2009_v51 }
  0x7b   :  { %1756 = vmatpush3.msra.mxu0 %v2315_v22 }
  0x7c   :  { %1795 = vmatprep.subr.mxu0 %v834_v41 }
  0xfc   :  { %v1605_v62 = vpop.f32.mrf.mxu0 }
  0xfd   :  { %1676 = vmatprep.subr.mxu1 %v1605_v62 }
  0xfe   :  { %v198_v63 = vpop.f32.mrf.mxu0  ;;  %1677 = vmatpush3.msra.mxu1 %v1605_v62 }
  0xff   :  { %1678 = vmatprep.subr.mxu1 %v198_v63 }
 0x100   :  { %1679 = vmatpush3.msra.mxu1 %v198_v63 }
 0x101   :  { %1681 = vmatmul.mubr.msk.f32.vlgmr.msra.gmra.mxu1 %vm391_vm1, %v2219_v0 }
 0x102   :  { %1687 = vmatprep.mubr.msk.f32.mxu1 %vm391_vm1, %v2222_v1  ;;  %v1640_v23 = vpop.f32.mrf.mxu1 }
 0x104   :  { %v290_v24 = vpop.f32.mrf.mxu1 }
 0x11c   :  { %v1675_v5 = vpop.f32.mrf.mxu0 }
 0x11d   :  { %1683 = vmatprep.subr.mxu1 %v1675_v5 }
 0x11e   :  { %v382_v6 = vpop.f32.mrf.mxu0  ;;  %1684 = vmatpush3.msra.mxu1 %v1675_v5  ;;  %v830_v5 = vld [vmem:[#allocation2 + $0xd8] sm:$0xff] }
 0x11f   :  { %1685 = vmatprep.subr.mxu1 %v382_v6 }
 0x120   :  { %1686 = vmatpush3.msra.mxu1 %v382_v6  ;;  %v737_v6 = vld [vmem:[#allocation2 + $0x50] sm:$0xff] }
 0x121   :  { %1688 = vmatmul.mubr.msk.f32.vlgmr.msra.gmra.mxu1 %vm391_vm1, %v2229_v7  ;;  %1690 = vmatprep.subr.mxu1 %v2009_v51 }
 0x122   :  { %1691 = vmatpush3.msra.mxu1 %v2213_v59  ;;  %1722 = vmatprep.mubr.msk.f32.mxu1 %vm2010_vm7, %v2009_v51 }
 0x123   :  { %1692 = vmatprep.subr.mxu1 %v2009_v51 }
 0x124   :  { %1693 = vmatpush3.msra.mxu1 %v2236_v8 }
 0x125   :  { %1694 = vmatprep.subr.mxu1 %v2009_v51 }
 0x126   :  { %1695 = vmatpush3.msra.mxu1 %v2241_v9 }
 0x127   :  { %1696 = vmatprep.subr.mxu1 %v2009_v51 }
 0x128   :  { %1697 = vmatpush3.msra.mxu1 %v2243_v10 }
 0x129   :  { %1698 = vmatprep.subr.mxu1 %v2009_v51 }
 0x12a   :  { %1699 = vmatpush3.msra.mxu1 %v2249_v11 }
 0x12b   :  { %1700 = vmatprep.subr.mxu1 %v2009_v51 }
 0x12c   :  { %1701 = vmatpush3.msra.mxu1 %v2255_v12 }
 0x12d   :  { %1702 = vmatprep.subr.mxu1 %v2009_v51 }
 0x12e   :  { %1703 = vmatpush3.msra.mxu1 %v2266_v13 }
 0x12f   :  { %1704 = vmatprep.subr.mxu1 %v2009_v51 }
 0x130   :  { %1705 = vmatpush3.msra.mxu1 %v2271_v14 }
 0x131   :  { %1706 = vmatprep.subr.mxu1 %v2009_v51 }
 0x132   :  { %1707 = vmatpush3.msra.mxu1 %v2277_v15 }
 0x133   :  { %1708 = vmatprep.subr.mxu1 %v2009_v51 }
 0x134   :  { %1709 = vmatpush3.msra.mxu1 %v2283_v16 }
 0x135   :  { %1710 = vmatprep.subr.mxu1 %v2009_v51 }
 0x136   :  { %1711 = vmatpush3.msra.mxu1 %v2289_v17 }
 0x137   :  { %1712 = vmatprep.subr.mxu1 %v2009_v51 }
 0x138   :  { %1713 = vmatpush3.msra.mxu1 %v2295_v18 }
 0x139   :  { %1714 = vmatprep.subr.mxu1 %v2009_v51 }
 0x13a   :  { %1715 = vmatpush3.msra.mxu1 %v2301_v19 }
 0x13b   :  { %1716 = vmatprep.subr.mxu1 %v2009_v51 }
 0x13c   :  { %1717 = vmatpush3.msra.mxu1 %v2307_v20 }
 0x13d   :  { %1718 = vmatprep.subr.mxu1 %v2009_v51 }
 0x13e   :  { %1719 = vmatpush3.msra.mxu1 %v2313_v21 }
 0x13f   :  { %1720 = vmatprep.subr.mxu1 %v2009_v51 }
 0x140   :  { %1721 = vmatpush3.msra.mxu1 %v2315_v22 }
 0x141   :  { %1760 = vmatprep.subr.mxu1 %v742_v40 }
 0x1c1   :  { %v1682_v25 = vpop.f32.mrf.mxu1 }
 0x1c2   :  { %v470_v28 = vadd.f32 %v1682_v25, %v1640_v23  ;;  %v829_v23 = vld [vmem:[#allocation2 + $0xd0] sm:$0xff]  ;;  %v828_v25 = vld [vmem:[#allocation2 + $0xc8] sm:$0xff] }
 0x1c3   :  { %v464_v26 = vpop.f32.mrf.mxu1 }
 0x1c4   :  { %v465_v29 = vadd.f32 %v464_v26, %v290_v24  ;;  %v736_v24 = vld [vmem:[#allocation2 + $0x48] sm:$0xff]  ;;  %v735_v26 = vld [vmem:[#allocation2 + $0x40] sm:$0xff] }
 0x1e1   :  { %v1689_v27 = vpop.f32.mrf.mxu1 }
 0x1e2   :  { %v555_v31 = vadd.f32 %v1689_v27, %v470_v28  ;;  %v827_v27 = vld [vmem:[#allocation2 + $0xc0] sm:$0xff]  ;;  %v734_v28 = vld [vmem:[#allocation2 + $0x38] sm:$0xff] }
 0x1e3   :  { %v545_v30 = vpop.f32.mrf.mxu1 }
 0x1e4   :  { %v554_v32 = vadd.f32 %v545_v30, %v465_v29  ;;  %v826_v29 = vld [vmem:[#allocation2 + $0xb8] sm:$0xff]  ;;  %v733_v30 = vld [vmem:[#allocation2 + $0x30] sm:$0xff] }
 0x1e6   :  { %v556_v33 = vadd.f32 %v555_v31, %v554_v32 }
 0x1e8   :  { %v557_v34 = vrot.slane %v556_v33, 4 }
 0x1ea   :  { %v558_v35 = vadd.f32 %v557_v34, %v556_v33  ;;  %v824_v33 = vld [vmem:[#allocation2 + $0xa8] sm:$0xff]  ;;  %v731_v34 = vld [vmem:[#allocation2 + $0x20] sm:$0xff] }
 0x1ec   :  { %v559_v36 = vrot.slane %v558_v35, 2 }
 0x1ee   :  { %v560_v37 = vadd.f32 %v559_v36, %v558_v35  ;;  %v823_v35 = vld [vmem:[#allocation2 + $0xa0] sm:$0xff]  ;;  %v730_v36 = vld [vmem:[#allocation2 + $0x18] sm:$0xff] }
 0x1f0   :  { %v561_v38 = vrot.slane %v560_v37, 1 }
 0x1f2   :  { %v562_v39 = vadd.f32 %v561_v38, %v560_v37  ;;  %v822_v37 = vld [vmem:[#allocation2 + $0x98] sm:$0xff]  ;;  %v729_v38 = vld [vmem:[#allocation2 + $0x10] sm:$0xff] }
 0x1f4   :  { %1723 = vmatmul.mubr.f32.vlgmr.msra.gmra.mxu1 %v562_v39  ;;  %v821_v39 = vld [vmem:[#allocation2 + $0x90] sm:$0xff] }
 0x1f5   :  { %1761 = vmatpush3.msra.mxu1 %v742_v40  ;;  %v728_v40 = vld [vmem:[#allocation2 + $0x8] sm:$0xff] }
 0x1f6   :  { %1762 = vmatprep.subr.mxu1 %v741_v42 }
 0x1f7   :  { %1763 = vmatpush3.msra.mxu1 %v741_v42  ;;  %v727_v42 = vld [vmem:[#allocation2] sm:$0xff] }
 0x1f8   :  { %1764 = vmatprep.subr.mxu1 %v740_v43 }
 0x1f9   :  { %1765 = vmatpush3.msra.mxu1 %v740_v43  ;;  %v819_v43 = vld [vmem:[#allocation2 + $0x80] sm:$0xff] }
 0x1fa   :  { %1766 = vmatprep.subr.mxu1 %v739_v44 }
 0x1fb   :  { %1767 = vmatpush3.msra.mxu1 %v739_v44  ;;  %v926_v44 = vld [vmem:[#allocation2 + $0x178] sm:$0xff] }
 0x1fc   :  { %1768 = vmatprep.subr.mxu1 %v738_v45 }
 0x1fd   :  { %1769 = vmatpush3.msra.mxu1 %v738_v45 }
 0x1fe   :  { %1770 = vmatprep.subr.mxu1 %v737_v6 }
 0x1ff   :  { %1771 = vmatpush3.msra.mxu1 %v737_v6  ;;  %v914_v6 = vld [vmem:[#allocation2 + $0x118] sm:$0xff] }
 0x200   :  { %1772 = vmatprep.subr.mxu1 %v736_v24 }
 0x201   :  { %1773 = vmatpush3.msra.mxu1 %v736_v24  ;;  %v912_v24 = vld [vmem:[#allocation2 + $0x108] sm:$0xff] }
 0x202   :  { %1774 = vmatprep.subr.mxu1 %v735_v26 }
 0x203   :  { %1775 = vmatpush3.msra.mxu1 %v735_v26 }
 0x204   :  { %1776 = vmatprep.subr.mxu1 %v734_v28 }
 0x205   :  { %1777 = vmatpush3.msra.mxu1 %v734_v28 }
 0x206   :  { %1778 = vmatprep.subr.mxu1 %v733_v30 }
 0x207   :  { %1779 = vmatpush3.msra.mxu1 %v733_v30 }
 0x2b4   :  { %v629_v47 = vpop.f32.mrf.mxu1 }
 0x2b5   :  { %v636_v48 = vrot.slane %v629_v47, %v2329_v46 }
 0x2b6   :  { %v1724_v49 = vpop.f32.mrf.mxu1 }
 0x2b7   :  { %v2332_v50 = vsub.f32 %v554_v32, %v636_v48  ;;  %v2334_v53 = vsub.f32 %v555_v31, %v636_v48  ;;  %v825_v31 = vld [vmem:[#allocation2 + $0xb0] sm:$0xff]  ;;  %v732_v32 = vld [vmem:[#allocation2 + $0x28] sm:$0xff] }
 0x2b8   :  { %1780 = vmatprep.subr.mxu1 %v732_v32 }
 0x2b9   :  { %v639_v54 = vmul.f32 %v2332_v50, %v2332_v50  ;;  %v640_v55 = vmul.f32 %v2334_v53, %v2334_v53  ;;  %1781 = vmatpush3.msra.mxu1 %v732_v32 }
 0x2ba   :  { %1782 = vmatprep.subr.mxu1 %v731_v34 }
 0x2bb   :  { %v641_v56 = vadd.f32 %v640_v55, %v639_v54  ;;  %1783 = vmatpush3.msra.mxu1 %v731_v34 }
 0x2bc   :  { %1784 = vmatprep.subr.mxu1 %v730_v36 }
 0x2bd   :  { %v642_v57 = vrot.slane %v641_v56, 4  ;;  %1785 = vmatpush3.msra.mxu1 %v730_v36 }
 0x2be   :  { %1786 = vmatprep.subr.mxu1 %v729_v38 }
 0x2bf   :  { %v643_v60 = vadd.f32 %v642_v57, %v641_v56  ;;  %1787 = vmatpush3.msra.mxu1 %v729_v38 }
 0x2c0   :  { %1788 = vmatprep.subr.mxu1 %v728_v40 }
 0x2c1   :  { %v644_v61 = vrot.slane %v643_v60, 2  ;;  %1789 = vmatpush3.msra.mxu1 %v728_v40 }
 0x2c2   :  { %1790 = vmatprep.subr.mxu1 %v727_v42 }
 0x2c3   :  { %v645_v52 = vadd.f32 %v644_v61, %v643_v60  ;;  %1791 = vmatpush3.msra.mxu1 %v727_v42  ;;  %v925_v61 = vld [vmem:[#allocation2 + $0x170] sm:$0xff] }
 0x2c4   :  { %1830 = vmatprep.subr.mxu1 %v926_v44 }
 0x2c5   :  { %v646_v62 = vrot.slane %v645_v52, 1 }
 0x2c7   :  { %v647_v63 = vadd.f32 %v646_v62, %v645_v52  ;;  %v924_v52 = vld [vmem:[#allocation2 + $0x168] sm:$0xff]  ;;  %v923_v62 = vld [vmem:[#allocation2 + $0x160] sm:$0xff] }
 0x2c9   :  { %1758 = vmatmul.mubr.f32.vlgmr.msra.gmra.mxu0 %v647_v63  ;;  %v920_v63 = vld [vmem:[#allocation2 + $0x148] sm:$0xff] }
 0x2ca   :  { %1796 = vmatpush3.msra.mxu0 %v834_v41  ;;  %v820_v41 = vld [vmem:[#allocation2 + $0x88] sm:$0xff] }
 0x2cb   :  { %1797 = vmatprep.subr.mxu0 %v833_v2 }
 0x2cc   :  { %1798 = vmatpush3.msra.mxu0 %v833_v2  ;;  %v919_v2 = vld [vmem:[#allocation2 + $0x140] sm:$0xff] }
 0x2cd   :  { %1799 = vmatprep.subr.mxu0 %v832_v3 }
 0x2ce   :  { %1800 = vmatpush3.msra.mxu0 %v832_v3  ;;  %v918_v3 = vld [vmem:[#allocation2 + $0x138] sm:$0xff] }
 0x2cf   :  { %1801 = vmatprep.subr.mxu0 %v831_v4 }
 0x2d0   :  { %1802 = vmatpush3.msra.mxu0 %v831_v4  ;;  %v916_v4 = vld [vmem:[#allocation2 + $0x128] sm:$0xff] }
 0x2d1   :  { %1803 = vmatprep.subr.mxu0 %v830_v5 }
 0x2d2   :  { %1804 = vmatpush3.msra.mxu0 %v830_v5  ;;  %v915_v5 = vld [vmem:[#allocation2 + $0x120] sm:$0xff] }
 0x2d3   :  { %1805 = vmatprep.subr.mxu0 %v829_v23 }
 0x2d4   :  { %1806 = vmatpush3.msra.mxu0 %v829_v23  ;;  %v913_v23 = vld [vmem:[#allocation2 + $0x110] sm:$0xff] }
 0x2d5   :  { %1807 = vmatprep.subr.mxu0 %v828_v25 }
 0x2d6   :  { %1808 = vmatpush3.msra.mxu0 %v828_v25  ;;  %v911_v25 = vld [vmem:[#allocation2 + $0x100] sm:$0xff] }
 0x2d7   :  { %1809 = vmatprep.subr.mxu0 %v827_v27 }
 0x2d8   :  { %1810 = vmatpush3.msra.mxu0 %v827_v27 }
 0x2d9   :  { %1811 = vmatprep.subr.mxu0 %v826_v29 }
 0x2da   :  { %1812 = vmatpush3.msra.mxu0 %v826_v29 }
 0x2db   :  { %1813 = vmatprep.subr.mxu0 %v825_v31 }
 0x2dc   :  { %1814 = vmatpush3.msra.mxu0 %v825_v31 }
 0x2dd   :  { %1815 = vmatprep.subr.mxu0 %v824_v33 }
 0x2de   :  { %1816 = vmatpush3.msra.mxu0 %v824_v33 }
 0x2df   :  { %1817 = vmatprep.subr.mxu0 %v823_v35 }
 0x2e0   :  { %1818 = vmatpush3.msra.mxu0 %v823_v35 }
 0x2e1   :  { %1819 = vmatprep.subr.mxu0 %v822_v37 }
 0x2e2   :  { %1820 = vmatpush3.msra.mxu0 %v822_v37 }
 0x2e3   :  { %1821 = vmatprep.subr.mxu0 %v821_v39 }
 0x2e4   :  { %1822 = vmatpush3.msra.mxu0 %v821_v39 }
 0x2e5   :  { %1823 = vmatprep.subr.mxu0 %v820_v41 }
 0x2e6   :  { %1824 = vmatpush3.msra.mxu0 %v820_v41 }
 0x2e7   :  { %1825 = vmatprep.subr.mxu0 %v819_v43 }
 0x2e8   :  { %1826 = vmatpush3.msra.mxu0 %v819_v43 }
 0x389   :  { %v714_v45 = vpop.f32.mrf.mxu0 }
 0x38a   :  { %v715_v47 = vadd.f32 1e-05, %v714_v45 }
 0x38b   :  { %v1759_v48 = vpop.f32.mrf.mxu0 }
 0x38c   :  { %1955 = vrsqrt.f32 %v715_v47 }
 0x399   :  { %v1956_v49 = vpop.eup %1955 }
 0x39a   :  { %v722_v54 = vrot.slane %v1956_v49, %v2329_v46  ;;  %v1959_v49 = vld [vmem:[%s2433_s0] sm:$0xff] }
 0x39c   :  { %v723_v55 = vmul.f32 %v722_v54, %v2332_v50  ;;  %v724_v56 = vmul.f32 %v722_v54, %v2334_v53  ;;  %v922_v50 = vld [vmem:[#allocation2 + $0x158] sm:$0xff]  ;;  %v921_v53 = vld [vmem:[#allocation2 + $0x150] sm:$0xff] }
 0x39e   :  { %v725_v57 = vmax.f32 %v723_v55, 0.0  ;;  %v726_v60 = vmax.f32 %v724_v56, 0.0  ;;  %v1960_v55 = vld [vmem:[%s2433_s0 + $0x8] sm:$0xff] }
 0x3a0   :  { %1792 = vmatprep.mubr.f32.mxu1 %v725_v57  ;;  %1827 = vmatprep.mubr.f32.mxu0 %v725_v57 }
 0x3a1   :  { %1793 = vmatmul.mubr.f32.vlgmr.msra.gmra.mxu1 %v726_v60  ;;  %1828 = vmatmul.mubr.f32.vlgmr.msra.gmra.mxu0 %v726_v60 }
 0x3a2   :  { %1831 = vmatpush3.msra.mxu1 %v926_v44  ;;  %1862 = vmatprep.mubr.f32.mxu1 %v725_v57 }
 0x3a3   :  { %1832 = vmatprep.subr.mxu1 %v925_v61  ;;  %1869 = vmatprep.mubr.msk.f32.mxu0 %vm391_vm1, %v2209_v58  ;;  %v917_v58 = vld [vmem:[#allocation2 + $0x130] sm:$0xff] }
 0x3a4   :  { %1833 = vmatpush3.msra.mxu1 %v925_v61 }
 0x3a5   :  { %1834 = vmatprep.subr.mxu1 %v924_v52 }
 0x3a6   :  { %1835 = vmatpush3.msra.mxu1 %v924_v52 }
 0x3a7   :  { %1836 = vmatprep.subr.mxu1 %v923_v62 }
 0x3a8   :  { %1837 = vmatpush3.msra.mxu1 %v923_v62 }
 0x3a9   :  { %1838 = vmatprep.subr.mxu1 %v922_v50 }
 0x3aa   :  { %1839 = vmatpush3.msra.mxu1 %v922_v50 }
 0x3ab   :  { %1840 = vmatprep.subr.mxu1 %v921_v53 }
 0x3ac   :  { %1841 = vmatpush3.msra.mxu1 %v921_v53 }
 0x3ad   :  { %1842 = vmatprep.subr.mxu1 %v920_v63 }
 0x3ae   :  { %1843 = vmatpush3.msra.mxu1 %v920_v63 }
 0x3af   :  { %1844 = vmatprep.subr.mxu1 %v919_v2 }
 0x3b0   :  { %1845 = vmatpush3.msra.mxu1 %v919_v2 }
 0x3b1   :  { %1846 = vmatprep.subr.mxu1 %v918_v3 }
 0x3b2   :  { %1847 = vmatpush3.msra.mxu1 %v918_v3 }
 0x3b3   :  { %1848 = vmatprep.subr.mxu1 %v917_v58 }
 0x3b4   :  { %1849 = vmatpush3.msra.mxu1 %v917_v58 }
 0x3b5   :  { %1850 = vmatprep.subr.mxu1 %v916_v4 }
 0x3b6   :  { %1851 = vmatpush3.msra.mxu1 %v916_v4 }
 0x3b7   :  { %1852 = vmatprep.subr.mxu1 %v915_v5 }
 0x3b8   :  { %1853 = vmatpush3.msra.mxu1 %v915_v5 }
 0x3b9   :  { %1854 = vmatprep.subr.mxu1 %v914_v6 }
 0x3ba   :  { %1855 = vmatpush3.msra.mxu1 %v914_v6 }
 0x3bb   :  { %1856 = vmatprep.subr.mxu1 %v913_v23 }
 0x3bc   :  { %1857 = vmatpush3.msra.mxu1 %v913_v23 }
 0x3bd   :  { %1858 = vmatprep.subr.mxu1 %v912_v24 }
 0x3be   :  { %1859 = vmatpush3.msra.mxu1 %v912_v24 }
 0x3bf   :  { %1860 = vmatprep.subr.mxu1 %v911_v25 }
 0x3c0   :  { %1861 = vmatpush3.msra.mxu1 %v911_v25 }
 0x3c1   :  { %1863 = vmatmul.mubr.f32.vlgmr.msra.gmra.mxu1 %v726_v60  ;;  %1914 = vmatprep.subr.mxu1 %v2009_v51 }
 0x3c2   :  { %1915 = vmatpush3.msra.mxu1 %v2213_v59  ;;  %1946 = vmatprep.mubr.msk.f32.mxu1 %vm2010_vm7, %v2009_v51 }
 0x3c3   :  { %1916 = vmatprep.subr.mxu1 %v2009_v51 }
 0x3c4   :  { %1917 = vmatpush3.msra.mxu1 %v2236_v8 }
 0x3c5   :  { %1918 = vmatprep.subr.mxu1 %v2009_v51 }
 0x3c6   :  { %1919 = vmatpush3.msra.mxu1 %v2241_v9 }
 0x3c7   :  { %1920 = vmatprep.subr.mxu1 %v2009_v51 }
 0x3c8   :  { %1921 = vmatpush3.msra.mxu1 %v2243_v10 }
 0x3c9   :  { %1922 = vmatprep.subr.mxu1 %v2009_v51 }
 0x3ca   :  { %1923 = vmatpush3.msra.mxu1 %v2249_v11 }
 0x3cb   :  { %1924 = vmatprep.subr.mxu1 %v2009_v51 }
 0x3cc   :  { %1925 = vmatpush3.msra.mxu1 %v2255_v12 }
 0x3cd   :  { %1926 = vmatprep.subr.mxu1 %v2009_v51 }
 0x3ce   :  { %1927 = vmatpush3.msra.mxu1 %v2266_v13 }
 0x3cf   :  { %1928 = vmatprep.subr.mxu1 %v2009_v51 }
 0x3d0   :  { %1929 = vmatpush3.msra.mxu1 %v2271_v14 }
 0x3d1   :  { %1930 = vmatprep.subr.mxu1 %v2009_v51 }
 0x3d2   :  { %1931 = vmatpush3.msra.mxu1 %v2277_v15 }
 0x3d3   :  { %1932 = vmatprep.subr.mxu1 %v2009_v51 }
 0x3d4   :  { %1933 = vmatpush3.msra.mxu1 %v2283_v16 }
 0x3d5   :  { %1934 = vmatprep.subr.mxu1 %v2009_v51 }
 0x3d6   :  { %1935 = vmatpush3.msra.mxu1 %v2289_v17 }
 0x3d7   :  { %1936 = vmatprep.subr.mxu1 %v2009_v51 }
 0x3d8   :  { %1937 = vmatpush3.msra.mxu1 %v2295_v18 }
 0x3d9   :  { %1938 = vmatprep.subr.mxu1 %v2009_v51 }
 0x3da   :  { %1939 = vmatpush3.msra.mxu1 %v2301_v19 }
 0x3db   :  { %1940 = vmatprep.subr.mxu1 %v2009_v51 }
 0x3dc   :  { %1941 = vmatpush3.msra.mxu1 %v2307_v20 }
 0x3dd   :  { %1942 = vmatprep.subr.mxu1 %v2009_v51 }
 0x3de   :  { %1943 = vmatpush3.msra.mxu1 %v2313_v21 }
 0x3df   :  { %1944 = vmatprep.subr.mxu1 %v2009_v51 }
 0x3e0   :  { %1945 = vmatpush3.msra.mxu1 %v2315_v22 }
 0x461   :  { %v1794_v26 = vpop.f32.mrf.mxu1 }
 0x462   :  { %1865 = vmatprep.subr.mxu0 %v1794_v26 }
 0x463   :  { %v809_v27 = vpop.f32.mrf.mxu1  ;;  %1866 = vmatpush3.msra.mxu0 %v1794_v26 }
 0x464   :  { %1867 = vmatprep.subr.mxu0 %v809_v27 }
 0x465   :  { %1868 = vmatpush3.msra.mxu0 %v809_v27 }
 0x466   :  { %1870 = vmatmul.mubr.msk.f32.vlgmr.msra.gmra.mxu0 %vm391_vm1, %v2219_v0 }
 0x467   :  { %1876 = vmatprep.mubr.msk.f32.mxu0 %vm391_vm1, %v2222_v1 }
 0x481   :  { %v1864_v28 = vpop.f32.mrf.mxu1 }
 0x482   :  { %1872 = vmatprep.subr.mxu0 %v1864_v28 }
 0x483   :  { %v993_v29 = vpop.f32.mrf.mxu1  ;;  %1873 = vmatpush3.msra.mxu0 %v1864_v28 }
 0x484   :  { %1874 = vmatprep.subr.mxu0 %v993_v29 }
 0x485   :  { %1875 = vmatpush3.msra.mxu0 %v993_v29 }
 0x486   :  { %1877 = vmatmul.mubr.msk.f32.vlgmr.msra.gmra.mxu0 %vm391_vm1, %v2229_v7  ;;  %1879 = vmatprep.subr.mxu0 %v2009_v51 }
 0x487   :  { %1880 = vmatpush3.msra.mxu0 %v2213_v59  ;;  %1911 = vmatprep.mubr.msk.f32.mxu0 %vm2010_vm7, %v2009_v51  ;;  %v1829_v59 = vpop.f32.mrf.mxu0 }
 0x488   :  { %1881 = vmatprep.subr.mxu0 %v2009_v51 }
 0x489   :  { %1882 = vmatpush3.msra.mxu0 %v2236_v8  ;;  %v901_v0 = vpop.f32.mrf.mxu0 }
 0x48a   :  { %1883 = vmatprep.subr.mxu0 %v2009_v51 }
 0x48b   :  { %1884 = vmatpush3.msra.mxu0 %v2241_v9 }
 0x48c   :  { %1885 = vmatprep.subr.mxu0 %v2009_v51 }
 0x48d   :  { %1886 = vmatpush3.msra.mxu0 %v2243_v10 }
 0x48e   :  { %1887 = vmatprep.subr.mxu0 %v2009_v51 }
 0x48f   :  { %1888 = vmatpush3.msra.mxu0 %v2249_v11 }
 0x490   :  { %1889 = vmatprep.subr.mxu0 %v2009_v51 }
 0x491   :  { %1890 = vmatpush3.msra.mxu0 %v2255_v12 }
 0x492   :  { %1891 = vmatprep.subr.mxu0 %v2009_v51 }
 0x493   :  { %1892 = vmatpush3.msra.mxu0 %v2266_v13 }
 0x494   :  { %1893 = vmatprep.subr.mxu0 %v2009_v51 }
 0x495   :  { %1894 = vmatpush3.msra.mxu0 %v2271_v14 }
 0x496   :  { %1895 = vmatprep.subr.mxu0 %v2009_v51 }
 0x497   :  { %1896 = vmatpush3.msra.mxu0 %v2277_v15 }
 0x498   :  { %1897 = vmatprep.subr.mxu0 %v2009_v51 }
 0x499   :  { %1898 = vmatpush3.msra.mxu0 %v2283_v16 }
 0x49a   :  { %1899 = vmatprep.subr.mxu0 %v2009_v51 }
 0x49b   :  { %1900 = vmatpush3.msra.mxu0 %v2289_v17 }
 0x49c   :  { %1901 = vmatprep.subr.mxu0 %v2009_v51 }
 0x49d   :  { %1902 = vmatpush3.msra.mxu0 %v2295_v18 }
 0x49e   :  { %1903 = vmatprep.subr.mxu0 %v2009_v51 }
 0x49f   :  { %1904 = vmatpush3.msra.mxu0 %v2301_v19 }
 0x4a0   :  { %1905 = vmatprep.subr.mxu0 %v2009_v51 }
 0x4a1   :  { %1906 = vmatpush3.msra.mxu0 %v2307_v20 }
 0x4a2   :  { %1907 = vmatprep.subr.mxu0 %v2009_v51 }
 0x4a3   :  { %1908 = vmatpush3.msra.mxu0 %v2313_v21 }
 0x4a4   :  { %1909 = vmatprep.subr.mxu0 %v2009_v51 }
 0x4a5   :  { %1910 = vmatpush3.msra.mxu0 %v2315_v22 }
 0x526   :  { %v1871_v1 = vpop.f32.mrf.mxu0 }
 0x527   :  { %v1074_v9 = vadd.f32 %v1871_v1, %v1829_v59 }
 0x528   :  { %v1068_v7 = vpop.f32.mrf.mxu0 }
 0x529   :  { %v1069_v10 = vadd.f32 %v1068_v7, %v901_v0 }
 0x546   :  { %v1878_v8 = vpop.f32.mrf.mxu0 }
 0x547   :  { %v1153_v12 = vadd.f32 %v1878_v8, %v1074_v9 }
 0x548   :  { %v1143_v11 = vpop.f32.mrf.mxu0 }
 0x549   :  { %v1152_v13 = vadd.f32 %v1143_v11, %v1069_v10 }
 0x54b   :  { %v1154_v14 = vadd.f32 %v1153_v12, %v1152_v13 }
 0x54d   :  { %v1155_v15 = vrot.slane %v1154_v14, 4 }
 0x54f   :  { %v1156_v16 = vadd.f32 %v1155_v15, %v1154_v14 }
 0x551   :  { %v1157_v17 = vrot.slane %v1156_v16, 2 }
 0x553   :  { %v1158_v18 = vadd.f32 %v1157_v17, %v1156_v16 }
 0x555   :  { %v1159_v19 = vrot.slane %v1158_v18, 1 }
 0x557   :  { %v1160_v20 = vadd.f32 %v1159_v19, %v1158_v18 }
 0x559   :  { %1912 = vmatmul.mubr.f32.vlgmr.msra.gmra.mxu0 %v1160_v20 }
 0x619   :  { %v1227_v51 = vpop.f32.mrf.mxu0 }
 0x61a   :  { %v1234_v21 = vrot.slane %v1227_v51, %v2329_v46 }
 0x61b   :  { %v1913_v22 = vpop.f32.mrf.mxu0 }
 0x61c   :  { %v1235_v30 = vsub.f32 %v1152_v13, %v1234_v21  ;;  %v1236_v31 = vsub.f32 %v1153_v12, %v1234_v21 }
 0x61e   :  { %v1237_v32 = vmul.f32 %v1235_v30, %v1235_v30  ;;  %v1238_v33 = vmul.f32 %v1236_v31, %v1236_v31 }
 0x620   :  { %v1239_v34 = vadd.f32 %v1238_v33, %v1237_v32 }
 0x622   :  { %v1240_v35 = vrot.slane %v1239_v34, 4 }
 0x624   :  { %v1241_v36 = vadd.f32 %v1240_v35, %v1239_v34 }
 0x626   :  { %v1242_v37 = vrot.slane %v1241_v36, 2 }
 0x628   :  { %v1243_v38 = vadd.f32 %v1242_v37, %v1241_v36 }
 0x62a   :  { %v1244_v39 = vrot.slane %v1243_v38, 1 }
 0x62c   :  { %v1245_v40 = vadd.f32 %v1244_v39, %v1243_v38 }
 0x62e   :  { %1947 = vmatmul.mubr.f32.vlgmr.msra.gmra.mxu1 %v1245_v40 }
 0x6ee   :  { %v1312_v41 = vpop.f32.mrf.mxu1 }
 0x6ef   :  { %v1313_v42 = vadd.f32 1e-05, %v1312_v41 }
 0x6f0   :  { %v1948_v43 = vpop.f32.mrf.mxu1 }
 0x6f1   :  { %1957 = vrsqrt.f32 %v1313_v42 }
 0x6fe   :  { %v1958_v44 = vpop.eup %1957 }
 0x6ff   :  { %v1320_v45 = vrot.slane %v1958_v44, %v2329_v46 }
 0x701   :  { %v1321_v47 = vmul.f32 %v1320_v45, %v1235_v30  ;;  %v1322_v48 = vmul.f32 %v1320_v45, %v1236_v31 }
 0x703   :  { %v1323_v54 = vadd.f32 %v1959_v49, %v1321_v47  ;;  %v1324_v56 = vadd.f32 %v1960_v55, %v1322_v48 }
 0x705   :  { %1325 = vst [vmem:[%s2437_s4] sm:$0xff] %v1323_v54  ;;  %1326 = vst [vmem:[%s2437_s4 + $0x8] sm:$0xff] %v1324_v56 }
 0x706   :  { %1331 = vsyncpa [#allocation3], 1 }
 0x707   :  { %1332 = vsyncpa [#allocation5], 1 }

</bundles_post_ra>
